<compile_context>
chip_gen: v7x
topology: tpu7x:2x2x1
jax: 0.10.0
libtpu: 0.0.40
codegen_flags: <defaults>
</compile_context>

<pallas_src>
from functools import partial

import jax
import jax.numpy as jnp
from jax.experimental import pallas as pl
from jax.experimental.pallas import tpu as pltpu


def _round_up(x, m):
    return (x + m - 1) // m * m


# Conservative per-call VMEM working-set budget: fits comfortably under the
# 32 MiB scoped default on v6e/v7x (v7x physical VMEM is only 64 MiB).
_VMEM_BUDGET = 24 * 1024 * 1024


def patch_embed_kernel(x_ref, w_ref, b_ref, o_ref):
    # x_ref: (TM, K) bf16 patches   w_ref: (K, E_pad) bf16 (resident)
    # b_ref: (1, E_pad) f32 (resident)   o_ref: (TM, E_pad) f32
    acc = jnp.dot(x_ref[...], w_ref[...],
                  preferred_element_type=jnp.float32)   # MXU, f32 accumulate
    o_ref[...] = acc + b_ref[...]                       # fused f32 bias epilogue


def prepare_patch_embed_params(weight, bias):
    """Cacheable param prep (hoist out of the per-call hot path).

    conv weight (E, C, ph, pw) -> (K, E_pad) bf16, bias (E,) -> (1, E_pad) f32.
    E is padded to a multiple of 256 when E > 128 (full-width MXU pushes on
    v6e/v7x), else 128 (lane-dense minimum, optimal on v5e and cheapest for
    tiny E)."""
    E, C, ph, pw = weight.shape
    K = C * ph * pw
    E_pad = _round_up(E, 256) if E > 128 else _round_up(E, 128)
    w2 = weight.reshape(E, K).T.astype(jnp.bfloat16)                 # (K, E)
    if E_pad != E:
        w2 = jnp.pad(w2, ((0, 0), (0, E_pad - E)))                   # (K, E_pad)
    b2 = bias.astype(jnp.float32)
    if E_pad != E:
        b2 = jnp.pad(b2, (0, E_pad - E))
    return w2, b2.reshape(1, E_pad)


def _choose_tm(m_rows, K, E_pad):
    """Largest M tile (multiple of 16 for bf16 packing) fitting the budget."""
    resident = K * E_pad * 2 + E_pad * 4                 # weight bf16 + bias f32 (once)
    per_row = 2 * (K * 2 + E_pad * 4)                    # x bf16 + out f32, double-buffered
    tm = 1024
    while tm > 16 and resident + tm * per_row > _VMEM_BUDGET:
        tm //= 2
    tm = min(tm, _round_up(m_rows, 16))
    return max(tm, 16)


def patch_embed_prepared(x, w2, b2, emb_dim, patch_size=(16, 16)):
    """x: (B, C, H, W) f32; w2/b2 from prepare_patch_embed_params.
    Returns (B, N, emb_dim) f32, matching PyTorch conv->flatten(2)->transpose."""
    B, C, H, W = x.shape
    ph, pw = patch_size
    Hp, Wp = H // ph, W // pw
    N = Hp * Wp
    K = C * ph * pw
    E_pad = w2.shape[1]
    M = B * N

    # --- patchify glue (plain JAX; fused into the pallas operand via
    # allow_input_fusion when jitted) ------------------------------------
    # TODO(synk): if XLA declines the fusion for some shape, switch the x
    # BlockSpec to read NCHW strips (1, C, ph, W) and do the relayout in VMEM.
    xp = x.reshape(B, C, Hp, ph, Wp, pw)
    xp = xp.transpose(0, 2, 4, 1, 3, 5).reshape(M, K).astype(jnp.bfloat16)
    if M < 16:  # bf16 minimum sublane tile is 16 rows
        xp = jnp.pad(xp, ((0, 16 - M), (0, 0)))
    M_rows = xp.shape[0]

    TM = _choose_tm(M_rows, K, E_pad)
    grid = (pl.cdiv(M_rows, TM),)   # ragged last block handled by Pallas masking

    working = K * E_pad * 2 + E_pad * 4 + 2 * TM * (K * 2 + E_pad * 4)
    vmem_limit = min(64 << 20, max(32 << 20, working + (8 << 20)))

    cost = pl.CostEstimate(
        flops=2 * M_rows * K * E_pad,
        transcendentals=0,
        bytes_accessed=M_rows * K * 2 + K * E_pad * 2 + E_pad * 4
                       + M_rows * E_pad * 4)

    # TODO(synk): for very large emb_dim where the resident weight would not
    # fit the VMEM budget, fall back to a 2-D (E, M) grid so the weight block
    # is still revisited across the inner M axis.
    out = pl.pallas_call(
        patch_embed_kernel,
        out_shape=jax.ShapeDtypeStruct((M_rows, E_pad), jnp.float32),
        grid_spec=pltpu.PrefetchScalarGridSpec(
            num_scalar_prefetch=0,
            grid=grid,
            in_specs=[
                pl.BlockSpec((TM, K), lambda m: (m, 0)),      # streamed patches
                pl.BlockSpec((K, E_pad), lambda m: (0, 0)),   # weight: DMA'd once
                pl.BlockSpec((1, E_pad), lambda m: (0, 0)),   # bias:   DMA'd once
            ],
            out_specs=pl.BlockSpec((TM, E_pad), lambda m: (m, 0)),
        ),
        compiler_params=pltpu.CompilerParams(
            dimension_semantics=("parallel",),               # shardable across v7x TCs
            allow_input_fusion=[True, False, False],         # fold patchify into operand 0
            vmem_limit_bytes=vmem_limit),
        cost_estimate=cost,
    )(xp, w2, b2)

    # No-op view when E was already lane-aligned and M needed no padding.
    # TODO(synk): emit bf16 output directly if the downstream consumer accepts it.
    if M_rows != M or E_pad != emb_dim:
        out = out[:M, :emb_dim]
    return out.reshape(B, N, emb_dim)


def patch_embed(x, weight, bias, patch_size=(16, 16)):
    """Convenience wrapper; prefer hoisting prepare_patch_embed_params."""
    w2, b2 = prepare_patch_embed_params(weight, bias)
    return patch_embed_prepared(x, w2, b2, weight.shape[0], patch_size)


def patch_embed_ref(x, weight, bias, patch_size=(16, 16)):
    """Pure-JAX reference: conv2d NCHW, stride=kernel, then flatten+transpose."""
    out = jax.lax.conv_general_dilated(
        x, weight, window_strides=patch_size, padding="VALID",
        dimension_numbers=("NCHW", "OIHW", "NCHW"))
    out = out + bias.reshape(1, -1, 1, 1)
    B, E, Hp, Wp = out.shape
    return out.reshape(B, E, Hp * Wp).transpose(0, 2, 1)


if __name__ == "__main__":
    # Small shapes consistent with the module: in_chans=1, patch_size=(16,16),
    # img_size=(64, 32) -> num_patches = 8, emb_dim=32.
    B, C, H, W = 2, 1, 64, 32
    E = 32
    ph, pw = 16, 16

    key = jax.random.PRNGKey(0)
    kx, kw, kb = jax.random.split(key, 3)
    x = jax.random.normal(kx, (B, C, H, W), dtype=jnp.float32)
    weight = jax.random.normal(kw, (E, C, ph, pw), dtype=jnp.float32) * 0.02
    bias = jax.random.normal(kb, (E,), dtype=jnp.float32) * 0.02

    # Param prep hoisted out of the per-call hot path (cacheable across calls).
    w2, b2 = prepare_patch_embed_params(weight, bias)
    fwd = jax.jit(partial(patch_embed_prepared, emb_dim=E, patch_size=(ph, pw)))

    out = jax.block_until_ready(fwd(x, w2, b2))
    ref = jax.block_until_ready(patch_embed_ref(x, weight, bias, (ph, pw)))

    assert out.shape == (B, (H // ph) * (W // pw), E), out.shape
    # bf16 matmul inputs (f32 accumulate) vs f32 conv reference -> loose tol.
    assert jnp.allclose(out, ref, atol=2e-2, rtol=2e-2), "mismatch vs reference"

    print("KERNEL_OK")
</pallas_src>

<mosaic_0001>
module attributes {stable_mosaic.version = 11 : i64} {
  func.func @patch_embed_kernel(%arg0: i32, %arg1: memref<16x256xbf16, #tpu.memory_space<vmem>>, %arg2: memref<256x128xbf16, #tpu.memory_space<vmem>>, %arg3: memref<1x128xf32, #tpu.memory_space<vmem>>, %arg4: memref<16x128xf32, #tpu.memory_space<vmem>>) attributes {dimension_semantics = [#tpu.dimension_semantics<parallel>], iteration_bounds = array<i64: 1>, scalar_prefetch = 0 : i64, scratch_operands = 0 : i64, tpu.core_type = #tpu.core_type<tc>, window_params = [{transform_indices = @transform_0, window_bounds = array<i64: 16, 256>}, {pipeline_mode = #tpu.pipeline_mode<synchronous>, transform_indices = @transform_1, window_bounds = array<i64: 256, 128>}, {pipeline_mode = #tpu.pipeline_mode<synchronous>, transform_indices = @transform_2, window_bounds = array<i64: 1, 128>}, {transform_indices = @transform_3, window_bounds = array<i64: 16, 128>}]} {
    %c0 = arith.constant 0 : index
    %c0_0 = arith.constant 0 : index
    %0 = vector.load %arg1[%c0, %c0_0] : memref<16x256xbf16, #tpu.memory_space<vmem>>, vector<16x256xbf16>
    %c0_1 = arith.constant 0 : index
    %c0_2 = arith.constant 0 : index
    %1 = vector.load %arg2[%c0_1, %c0_2] : memref<256x128xbf16, #tpu.memory_space<vmem>>, vector<256x128xbf16>
    %cst = arith.constant dense<0.000000e+00> : vector<16x128xf32>
    %2 = tpu.matmul %0, %1, %cst {dimension_numbers = #tpu.dot_dimension_numbers<[1], [0], [0], [1], [0, 0, 1, 1], [], []>} : vector<16x256xbf16>, vector<256x128xbf16>, vector<16x128xf32> -> vector<16x128xf32>
    %c0_3 = arith.constant 0 : index
    %c0_4 = arith.constant 0 : index
    %3 = vector.load %arg3[%c0_3, %c0_4] : memref<1x128xf32, #tpu.memory_space<vmem>>, vector<1x128xf32>
    %4 = vector.broadcast %3 : vector<1x128xf32> to vector<16x128xf32>
    %5 = arith.addf %2, %4 : vector<16x128xf32>
    %c0_5 = arith.constant 0 : index
    %c0_6 = arith.constant 0 : index
    %6 = vector.load %arg4[%c0_5, %c0_6] : memref<16x128xf32, #tpu.memory_space<vmem>>, vector<16x128xf32>
    tpu.vector_store %arg4[%c0_5, %c0_6], %5 {strides = array<i32>} : memref<16x128xf32, #tpu.memory_space<vmem>>, vector<16x128xf32>,
    return
  }
  func.func @transform_0(%arg0: i32) -> (i32, i32) {
    %c0_i32 = arith.constant 0 : i32
    %c0_i32_0 = arith.constant 0 : i32
    return %arg0, %c0_i32 : i32, i32
  }
  func.func @transform_1(%arg0: i32) -> (i32, i32) {
    %c0_i32 = arith.constant 0 : i32
    %c0_i32_0 = arith.constant 0 : i32
    %c0_i32_1 = arith.constant 0 : i32
    return %c0_i32, %c0_i32_0 : i32, i32
  }
  func.func @transform_2(%arg0: i32) -> (i32, i32) {
    %c0_i32 = arith.constant 0 : i32
    %c0_i32_0 = arith.constant 0 : i32
    %c0_i32_1 = arith.constant 0 : i32
    return %c0_i32, %c0_i32_0 : i32, i32
  }
  func.func @transform_3(%arg0: i32) -> (i32, i32) {
    %c0_i32 = arith.constant 0 : i32
    %c0_i32_0 = arith.constant 0 : i32
    return %arg0, %c0_i32 : i32, i32
  }
}

</mosaic_0001>

<bundles_post_ra>
// kernel: patch_embed_prepared.1
= control target key start
LH: loop header
LB: loop body
LE: loop exit
PB: predicated region body
PF: predicated region fallthrough
CT: control target
= control target key end

     0   :  { %s352_s1 = inlined_call_operand.vmem [shape: bf16[256,128], index: 1, kind: input, shape index: {}]   ;;  %s353_s0 = inlined_call_operand.vmem [shape: bf16[16,256], index: 0, kind: input, shape index: {}]   ;;  %s354_s2 = inlined_call_operand.vmem [shape: f32[1,128], index: 2, kind: input, shape index: {}]   ;;  %s355_s3 = inlined_call_operand.vmem [shape: f32[16,128], index: 3, kind: output, shape index: {}]  }
   0x1   :  { %v250_v0 = vld [vmem:[%s352_s1 + $0x40] sm:$0xff]   ;;  %v252_v2 = vld [vmem:[%s352_s1 + $0x48] sm:$0xff]   ;;  %v254_v4 = vld [vmem:[%s352_s1 + $0x50] sm:$0xff]  }
   0x2   :  { %v251_v1 = vld [vmem:[%s352_s1] sm:$0xff]   ;;  %228 = vmatprep.subr.bf16.mxu0 %v250_v0  ;;  %v253_v3 = vld [vmem:[%s352_s1 + $0x8] sm:$0xff]   ;;  %v255_v5 = vld [vmem:[%s352_s1 + $0x10] sm:$0xff]  }
   0x3   :  { %229 = vmatpush3.bf16.msra.mxu0 %v251_v1  ;;  %v256_v6 = vld [vmem:[%s352_s1 + $0x58] sm:$0xff]   ;;  %v258_v8 = vld [vmem:[%s352_s1 + $0x60] sm:$0xff]   ;;  %v260_v10 = vld [vmem:[%s352_s1 + $0x68] sm:$0xff]  }
   0x4   :  { %230 = vmatprep.subr.bf16.mxu0 %v252_v2  ;;  %v257_v7 = vld [vmem:[%s352_s1 + $0x18] sm:$0xff]   ;;  %v259_v9 = vld [vmem:[%s352_s1 + $0x20] sm:$0xff]   ;;  %v261_v12 = vld [vmem:[%s352_s1 + $0x28] sm:$0xff]  }
   0x5   :  { %v268_v11 = vld [vmem:[%s353_s0 + $0x4] ss:$8 sps:$4 sm:$0xff]   ;;  %v262_v13 = vld [vmem:[%s352_s1 + $0x70] sm:$0xff]   ;;  %v264_v15 = vld [vmem:[%s352_s1 + $0x78] sm:$0xff]  }
   0x6   :  { %194 = vmatprep.mubr.bf16.mxu0 %v268_v11  ;;  %v263_v14 = vld [vmem:[%s352_s1 + $0x30] sm:$0xff]   ;;  %v265_v16 = vld [vmem:[%s352_s1 + $0x38] sm:$0xff]   ;;  %v266_v17 = vld [vmem:[%s353_s0] ss:$8 sps:$4 sm:$0xff]  }
   0x7   :  { %231 = vmatpush3.bf16.msra.mxu0 %v253_v3  ;;  %v209_v19 = vld [vmem:[%s354_s2] ss:$0 sm:$0xff] }
   0x8   :  { %232 = vmatprep.subr.bf16.mxu0 %v254_v4 }
   0xb   :  { %233 = vmatpush3.bf16.msra.mxu0 %v255_v5 }
   0xc   :  { %234 = vmatprep.subr.bf16.mxu0 %v256_v6 }
   0xf   :  { %235 = vmatpush3.bf16.msra.mxu0 %v257_v7 }
  0x10   :  { %236 = vmatprep.subr.bf16.mxu0 %v258_v8 }
  0x13   :  { %237 = vmatpush3.bf16.msra.mxu0 %v259_v9 }
  0x14   :  { %238 = vmatprep.subr.bf16.mxu0 %v260_v10 }
  0x17   :  { %239 = vmatpush3.bf16.msra.mxu0 %v261_v12 }
  0x18   :  { %240 = vmatprep.subr.bf16.mxu0 %v262_v13 }
  0x1b   :  { %241 = vmatpush3.bf16.msra.mxu0 %v263_v14 }
  0x1c   :  { %242 = vmatprep.subr.bf16.mxu0 %v264_v15 }
  0x1f   :  { %243 = vmatpush3.bf16.msra.mxu0 %v265_v16 }
  0x22   :  { %195 = vmatmul.mubr.bf16.vlgmr.msra.gmra.mrb[0].mxu0 %v266_v17 }
  0xf5   :  { %v244_v18 = vpop.f32.mrb[0].mxu0 }
  0xf6   :  { %v245_v20 = vpop.f32.mrb[1].mxu0 }
  0xf7   :  { %v246_v21 = vadd.f32 %v245_v20, %v244_v18  ;;  %v247_v22 = vpop.f32.mrb[2].mxu0 }
  0xf8   :  { %v248_v23 = vpop.f32.mrb[3].mxu0 }
  0xf9   :  { %v197_v24 = vadd.f32 %v246_v21, %v209_v19  ;;  %v249_v25 = vadd.f32 %v248_v23, %v247_v22 }
  0xfb   :  { %203 = vst [vmem:[%s355_s3] sm:$0xff] %v197_v24  ;;  %v200_v26 = vadd.f32 %v249_v25, %v209_v19 }
  0xfd   :  { %204 = vst [vmem:[%s355_s3 + $0x8] sm:$0xff] %v200_v26 }

</bundles_post_ra>
